<compile_context>
chip_gen: v7x
topology: tpu7x:2x2x1
jax: 0.10.0
libtpu: 0.0.40
codegen_flags: <defaults>
</compile_context>

<pallas_src>
import functools

import numpy as np
import jax
import jax.numpy as jnp
from jax import lax
from jax.experimental import pallas as pl
from jax.experimental.pallas import tpu as pltpu

_EPS = 1e-5          # nn.InstanceNorm1d default
_NEG_SLOPE = 0.01    # nn.LeakyReLU slope used in the module
_MIN_GRID_STEPS = 8  # keep the DMA pipeline deep and both v7x TensorCores busy


def _round_up(x, m):
    return ((x + m - 1) // m) * m


def _row_instance_norm(x, eps=_EPS):
    # Per-row normalization over the last (feature) dim, biased variance.
    # mean and E[x^2] reduce independently (shorter dependent XLU chain than
    # mean followed by mean((x - mean)^2)); clamp guards E[x^2]-mean^2 >= 0.
    m = jnp.mean(x, axis=-1, keepdims=True)
    ex2 = jnp.mean(x * x, axis=-1, keepdims=True)
    var = jnp.maximum(ex2 - m * m, 0.0)
    return (x - m) * lax.rsqrt(var + eps)     # rsqrt -> EUP slot


def _leaky_relu(x, slope=_NEG_SLOPE):
    return jnp.where(x >= 0, x, slope * x)


def _node_emb_kernel(res_ref, atom_ref, w_res_ref, w_top_ref, w_bot_ref,
                     out_ref, *, matmul_dtype):
    # res_ref:  (T, Cin)   atom_ref: (T, H)
    # w_res_ref:(Cin, H)   w_top_ref/w_bot_ref: (H, H)   out_ref: (T, H)

    # --- residue branch: instance norm -> linear -> leaky relu --------------
    res = res_ref[...].astype(jnp.float32)
    res_n = _row_instance_norm(res)
    h = jnp.dot(res_n.astype(matmul_dtype), w_res_ref[...],
                preferred_element_type=jnp.float32)
    h = _leaky_relu(h)

    # --- node linear: Linear(concat(h, atom)) == h @ W_top + atom @ W_bot ---
    atom = atom_ref[...].astype(matmul_dtype)
    y = jnp.dot(h.astype(matmul_dtype), w_top_ref[...],
                preferred_element_type=jnp.float32)
    y = y + jnp.dot(atom, w_bot_ref[...], preferred_element_type=jnp.float32)

    # --- node norm + activation ----------------------------------------------
    y = _row_instance_norm(y)
    out_ref[...] = _leaky_relu(y).astype(out_ref.dtype)


def _choose_tile_rows(n, cap):
    """Row tile: multiple of 8, <= cap, and >= _MIN_GRID_STEPS grid steps
    whenever N allows it (so megacore + double-buffering actually engage).
    Padding waste is at most 7 rows of the final (masked) block."""
    cap = max(8, _round_up(cap, 8))
    steps = max(_MIN_GRID_STEPS, pl.cdiv(n, cap))
    tile = _round_up(pl.cdiv(n, steps), 8)
    return max(8, min(tile, cap))


def _vmem_limit_bytes(tile_rows, c_in, h_dim, act_bytes, w_bytes):
    """Estimate the double-buffered VMEM working set and add headroom."""
    lane, sub = 128, 8
    cin_l = _round_up(c_in, lane)
    h_l = _round_up(h_dim, lane)
    # streamed tiles (res, atom, out), double-buffered
    stream = 2 * tile_rows * (cin_l * act_bytes + h_l * act_bytes + h_l * 4)
    # resident weights (W_res + two (H,H) halves), double-buffered allocation
    weights = 2 * (_round_up(c_in, sub) * h_l + 2 * h_l * h_l) * w_bytes
    # in-kernel f32 temporaries (res_n, h, y)
    scratch = tile_rows * (cin_l + 2 * h_l) * 4
    est = stream + weights + scratch + (4 << 20)
    # floor 32 MiB (covers v5e's 16 MiB default scoped limit), cap 48 MiB
    # (safe within v7x's 64 MiB physical VMEM per TensorCore).
    return int(min(48 << 20, max(32 << 20, est)))


@functools.partial(jax.jit, static_argnames=("tile_rows", "matmul_dtype"))
def node_emb_layer(res_feat, atom_emb, w_res, w_node, *,
                   tile_rows=2048, matmul_dtype=jnp.bfloat16):
    """NodeEmbLayer forward.

    res_feat: (N, Cin), atom_emb: (N, H), w_res: (Cin, H)  [= torch weight.T],
    w_node: (2H, H)  [= torch weight.T].  Returns (N, H) float32.
    """
    n, c_in = res_feat.shape
    h_dim = w_res.shape[1]
    assert atom_emb.shape == (n, h_dim)
    assert w_node.shape == (2 * h_dim, h_dim)

    # Weights are small and stay fully resident in VMEM; pre-cast to the MXU
    # operand dtype and pre-split W_node so the kernel never slices a VMEM ref.
    w_res_c = w_res.astype(matmul_dtype)
    w_top = w_node[:h_dim].astype(matmul_dtype)
    w_bot = w_node[h_dim:].astype(matmul_dtype)

    # Activations stream in their own (floating) dtype; casts happen in-kernel.
    if not jnp.issubdtype(res_feat.dtype, jnp.floating):
        res_feat = res_feat.astype(jnp.float32)
    if not jnp.issubdtype(atom_emb.dtype, jnp.floating):
        atom_emb = atom_emb.astype(jnp.float32)

    tile = _choose_tile_rows(n, tile_rows)
    grid = (pl.cdiv(n, tile),)  # no host padding; last partial block is masked

    act_bytes = max(jnp.dtype(res_feat.dtype).itemsize,
                    jnp.dtype(atom_emb.dtype).itemsize)
    vmem_limit = _vmem_limit_bytes(tile, c_in, h_dim, act_bytes,
                                   jnp.dtype(matmul_dtype).itemsize)

    kernel = functools.partial(_node_emb_kernel, matmul_dtype=matmul_dtype)

    out = pl.pallas_call(
        kernel,
        out_shape=jax.ShapeDtypeStruct((n, h_dim), jnp.float32),
        grid_spec=pl.GridSpec(
            grid=grid,
            in_specs=[
                pl.BlockSpec((tile, c_in), lambda i: (i, 0)),        # res rows
                pl.BlockSpec((tile, h_dim), lambda i: (i, 0)),       # atom rows
                pl.BlockSpec((c_in, h_dim), lambda i: (0, 0)),       # W_res (resident)
                pl.BlockSpec((h_dim, h_dim), lambda i: (0, 0)),      # W_node top (resident)
                pl.BlockSpec((h_dim, h_dim), lambda i: (0, 0)),      # W_node bottom (resident)
            ],
            out_specs=pl.BlockSpec((tile, h_dim), lambda i: (i, 0)),
        ),
        compiler_params=pltpu.CompilerParams(
            dimension_semantics=("parallel",),   # rows independent -> megacore
            vmem_limit_bytes=vmem_limit,
        ),
    )(res_feat, atom_emb, w_res_c, w_top, w_bot)

    return out


def _reference(res_feat, atom_emb, w_res, w_node):
    x = res_feat.astype(jnp.float32)
    x = (x - x.mean(-1, keepdims=True)) / jnp.sqrt(x.var(-1, keepdims=True) + _EPS)
    h = jnp.dot(x, w_res, precision=lax.Precision.HIGHEST)
    h = jnp.where(h >= 0, h, _NEG_SLOPE * h)
    z = jnp.concatenate([h, atom_emb.astype(jnp.float32)], axis=1)
    z = jnp.dot(z, w_node, precision=lax.Precision.HIGHEST)
    z = (z - z.mean(-1, keepdims=True)) / jnp.sqrt(z.var(-1, keepdims=True) + _EPS)
    return jnp.where(z >= 0, z, _NEG_SLOPE * z)


if __name__ == "__main__":
    key = jax.random.PRNGKey(0)
    k1, k2, k3, k4 = jax.random.split(key, 4)

    # module-consistent shapes: node_emb_in=27, node_emb_h=256.
    # N=100 is deliberately not a multiple of the row tile, exercising the
    # masked last block (no host-side padding).
    N, Cin, H = 100, 27, 256
    res_feat = jax.random.normal(k1, (N, Cin), dtype=jnp.float32)
    atom_emb = jax.random.normal(k2, (N, H), dtype=jnp.float32)
    # Linear weights stored as (in, out) == torch weight.T, bias=False
    w_res = 0.05 * jax.random.normal(k3, (Cin, H), dtype=jnp.float32)
    w_node = 0.05 * jax.random.normal(k4, (2 * H, H), dtype=jnp.float32)

    ref = _reference(res_feat, atom_emb, w_res, w_node)

    # strict-accuracy path: f32 MXU operands
    out_f32 = jax.block_until_ready(
        node_emb_layer(res_feat, atom_emb, w_res, w_node,
                       matmul_dtype=jnp.float32))
    np.testing.assert_allclose(np.asarray(out_f32), np.asarray(ref),
                               atol=5e-3, rtol=5e-3)

    # default fast path: bf16 MXU operands (f32 accumulation, f32 norms);
    # the trailing instance-norm renormalizes, keeping error at the 1e-2 level.
    out_bf16 = jax.block_until_ready(
        node_emb_layer(res_feat, atom_emb, w_res, w_node,
                       matmul_dtype=jnp.bfloat16))
    np.testing.assert_allclose(np.asarray(out_bf16), np.asarray(ref),
                               atol=5e-2, rtol=5e-2)

    print("KERNEL_OK")
</pallas_src>

<mosaic_0001>
module attributes {stable_mosaic.version = 11 : i64} {
  func.func @_node_emb_kernel(%arg0: i32, %arg1: memref<16x27xf32, #tpu.memory_space<vmem>>, %arg2: memref<16x256xf32, #tpu.memory_space<vmem>>, %arg3: memref<27x256xf32, #tpu.memory_space<vmem>>, %arg4: memref<256x256xf32, #tpu.memory_space<vmem>>, %arg5: memref<256x256xf32, #tpu.memory_space<vmem>>, %arg6: memref<16x256xf32, #tpu.memory_space<vmem>>) attributes {dimension_semantics = [#tpu.dimension_semantics<parallel>], iteration_bounds = array<i64: 7>, scalar_prefetch = 0 : i64, scratch_operands = 0 : i64, tpu.core_type = #tpu.core_type<tc>, window_params = [{transform_indices = @transform_0, window_bounds = array<i64: 16, 27>}, {transform_indices = @transform_1, window_bounds = array<i64: 16, 256>}, {pipeline_mode = #tpu.pipeline_mode<synchronous>, transform_indices = @transform_2, window_bounds = array<i64: 27, 256>}, {pipeline_mode = #tpu.pipeline_mode<synchronous>, transform_indices = @transform_3, window_bounds = array<i64: 256, 256>}, {pipeline_mode = #tpu.pipeline_mode<synchronous>, transform_indices = @transform_4, window_bounds = array<i64: 256, 256>}, {transform_indices = @transform_5, window_bounds = array<i64: 16, 256>}]} {
    %c0 = arith.constant 0 : index
    %c0_0 = arith.constant 0 : index
    %0 = vector.load %arg1[%c0, %c0_0] : memref<16x27xf32, #tpu.memory_space<vmem>>, vector<16x27xf32>
    %cst = arith.constant dense<0.000000e+00> : vector<16xf32>
    %1 = vector.multi_reduction <add>, %0, %cst [1] : vector<16x27xf32> to vector<16xf32>
    %2 = vector.shape_cast %1 : vector<16xf32> to vector<16x1xf32>
    %cst_1 = arith.constant 2.700000e+01 : f32
    %3 = vector.broadcast %cst_1 : f32 to vector<16x1xf32>
    %4 = arith.divf %2, %3 : vector<16x1xf32>
    %5 = arith.mulf %0, %0 : vector<16x27xf32>
    %cst_2 = arith.constant dense<0.000000e+00> : vector<16xf32>
    %6 = vector.multi_reduction <add>, %5, %cst_2 [1] : vector<16x27xf32> to vector<16xf32>
    %7 = vector.shape_cast %6 : vector<16xf32> to vector<16x1xf32>
    %cst_3 = arith.constant 2.700000e+01 : f32
    %8 = vector.broadcast %cst_3 : f32 to vector<16x1xf32>
    %9 = arith.divf %7, %8 : vector<16x1xf32>
    %10 = arith.mulf %4, %4 : vector<16x1xf32>
    %11 = arith.subf %9, %10 : vector<16x1xf32>
    %cst_4 = arith.constant 0.000000e+00 : f32
    %12 = vector.broadcast %cst_4 : f32 to vector<16x1xf32>
    %13 = arith.maximumf %11, %12 : vector<16x1xf32>
    %14 = vector.broadcast %4 : vector<16x1xf32> to vector<16x27xf32>
    %15 = arith.subf %0, %14 : vector<16x27xf32>
    %cst_5 = arith.constant 9.99999974E-6 : f32
    %16 = vector.broadcast %cst_5 : f32 to vector<16x1xf32>
    %17 = arith.addf %13, %16 : vector<16x1xf32>
    %18 = math.rsqrt %17 : vector<16x1xf32>
    %19 = vector.broadcast %18 : vector<16x1xf32> to vector<16x27xf32>
    %20 = arith.mulf %15, %19 : vector<16x27xf32>
    %c0_6 = arith.constant 0 : index
    %c0_7 = arith.constant 0 : index
    %21 = vector.load %arg3[%c0_6, %c0_7] : memref<27x256xf32, #tpu.memory_space<vmem>>, vector<27x256xf32>
    %cst_8 = arith.constant dense<0.000000e+00> : vector<16x256xf32>
    %22 = tpu.matmul %20, %21, %cst_8 {dimension_numbers = #tpu.dot_dimension_numbers<[1], [0], [0], [1], [0, 0, 1, 1], [], []>} : vector<16x27xf32>, vector<27x256xf32>, vector<16x256xf32> -> vector<16x256xf32>
    %cst_9 = arith.constant 0.000000e+00 : f32
    %23 = vector.broadcast %cst_9 : f32 to vector<16x256xf32>
    %24 = arith.cmpf oge, %22, %23 : vector<16x256xf32>
    %cst_10 = arith.constant 0.00999999977 : f32
    %25 = vector.broadcast %cst_10 : f32 to vector<16x256xf32>
    %26 = arith.mulf %25, %22 : vector<16x256xf32>
    %27 = arith.select %24, %22, %26 : vector<16x256xi1>, vector<16x256xf32>
    %c0_11 = arith.constant 0 : index
    %c0_12 = arith.constant 0 : index
    %28 = vector.load %arg2[%c0_11, %c0_12] : memref<16x256xf32, #tpu.memory_space<vmem>>, vector<16x256xf32>
    %c0_13 = arith.constant 0 : index
    %c0_14 = arith.constant 0 : index
    %29 = vector.load %arg4[%c0_13, %c0_14] : memref<256x256xf32, #tpu.memory_space<vmem>>, vector<256x256xf32>
    %cst_15 = arith.constant dense<0.000000e+00> : vector<16x256xf32>
    %30 = tpu.matmul %27, %29, %cst_15 {dimension_numbers = #tpu.dot_dimension_numbers<[1], [0], [0], [1], [0, 0, 1, 1], [], []>} : vector<16x256xf32>, vector<256x256xf32>, vector<16x256xf32> -> vector<16x256xf32>
    %c0_16 = arith.constant 0 : index
    %c0_17 = arith.constant 0 : index
    %31 = vector.load %arg5[%c0_16, %c0_17] : memref<256x256xf32, #tpu.memory_space<vmem>>, vector<256x256xf32>
    %cst_18 = arith.constant dense<0.000000e+00> : vector<16x256xf32>
    %32 = tpu.matmul %28, %31, %cst_18 {dimension_numbers = #tpu.dot_dimension_numbers<[1], [0], [0], [1], [0, 0, 1, 1], [], []>} : vector<16x256xf32>, vector<256x256xf32>, vector<16x256xf32> -> vector<16x256xf32>
    %33 = arith.addf %30, %32 : vector<16x256xf32>
    %cst_19 = arith.constant dense<0.000000e+00> : vector<16xf32>
    %34 = vector.multi_reduction <add>, %33, %cst_19 [1] : vector<16x256xf32> to vector<16xf32>
    %35 = vector.shape_cast %34 : vector<16xf32> to vector<16x1xf32>
    %cst_20 = arith.constant 2.560000e+02 : f32
    %36 = vector.broadcast %cst_20 : f32 to vector<16x1xf32>
    %37 = arith.divf %35, %36 : vector<16x1xf32>
    %38 = arith.mulf %33, %33 : vector<16x256xf32>
    %cst_21 = arith.constant dense<0.000000e+00> : vector<16xf32>
    %39 = vector.multi_reduction <add>, %38, %cst_21 [1] : vector<16x256xf32> to vector<16xf32>
    %40 = vector.shape_cast %39 : vector<16xf32> to vector<16x1xf32>
    %cst_22 = arith.constant 2.560000e+02 : f32
    %41 = vector.broadcast %cst_22 : f32 to vector<16x1xf32>
    %42 = arith.divf %40, %41 : vector<16x1xf32>
    %43 = arith.mulf %37, %37 : vector<16x1xf32>
    %44 = arith.subf %42, %43 : vector<16x1xf32>
    %cst_23 = arith.constant 0.000000e+00 : f32
    %45 = vector.broadcast %cst_23 : f32 to vector<16x1xf32>
    %46 = arith.maximumf %44, %45 : vector<16x1xf32>
    %47 = vector.broadcast %37 : vector<16x1xf32> to vector<16x256xf32>
    %48 = arith.subf %33, %47 : vector<16x256xf32>
    %cst_24 = arith.constant 9.99999974E-6 : f32
    %49 = vector.broadcast %cst_24 : f32 to vector<16x1xf32>
    %50 = arith.addf %46, %49 : vector<16x1xf32>
    %51 = math.rsqrt %50 : vector<16x1xf32>
    %52 = vector.broadcast %51 : vector<16x1xf32> to vector<16x256xf32>
    %53 = arith.mulf %48, %52 : vector<16x256xf32>
    %cst_25 = arith.constant 0.000000e+00 : f32
    %54 = vector.broadcast %cst_25 : f32 to vector<16x256xf32>
    %55 = arith.cmpf oge, %53, %54 : vector<16x256xf32>
    %cst_26 = arith.constant 0.00999999977 : f32
    %56 = vector.broadcast %cst_26 : f32 to vector<16x256xf32>
    %57 = arith.mulf %56, %53 : vector<16x256xf32>
    %58 = arith.select %55, %53, %57 : vector<16x256xi1>, vector<16x256xf32>
    %c0_27 = arith.constant 0 : index
    %c0_28 = arith.constant 0 : index
    %59 = vector.load %arg6[%c0_27, %c0_28] : memref<16x256xf32, #tpu.memory_space<vmem>>, vector<16x256xf32>
    tpu.vector_store %arg6[%c0_27, %c0_28], %58 {strides = array<i32>} : memref<16x256xf32, #tpu.memory_space<vmem>>, vector<16x256xf32>,
    return
  }
  func.func @transform_0(%arg0: i32) -> (i32, i32) {
    %c0_i32 = arith.constant 0 : i32
    %c0_i32_0 = arith.constant 0 : i32
    return %arg0, %c0_i32 : i32, i32
  }
  func.func @transform_1(%arg0: i32) -> (i32, i32) {
    %c0_i32 = arith.constant 0 : i32
    %c0_i32_0 = arith.constant 0 : i32
    return %arg0, %c0_i32 : i32, i32
  }
  func.func @transform_2(%arg0: i32) -> (i32, i32) {
    %c0_i32 = arith.constant 0 : i32
    %c0_i32_0 = arith.constant 0 : i32
    %c0_i32_1 = arith.constant 0 : i32
    return %c0_i32, %c0_i32_0 : i32, i32
  }
  func.func @transform_3(%arg0: i32) -> (i32, i32) {
    %c0_i32 = arith.constant 0 : i32
    %c0_i32_0 = arith.constant 0 : i32
    %c0_i32_1 = arith.constant 0 : i32
    return %c0_i32, %c0_i32_0 : i32, i32
  }
  func.func @transform_4(%arg0: i32) -> (i32, i32) {
    %c0_i32 = arith.constant 0 : i32
    %c0_i32_0 = arith.constant 0 : i32
    %c0_i32_1 = arith.constant 0 : i32
    return %c0_i32, %c0_i32_0 : i32, i32
  }
  func.func @transform_5(%arg0: i32) -> (i32, i32) {
    %c0_i32 = arith.constant 0 : i32
    %c0_i32_0 = arith.constant 0 : i32
    return %arg0, %c0_i32 : i32, i32
  }
}

</mosaic_0001>

<bundles_post_ra>
// kernel: node_emb_layer.1
= control target key start
LH: loop header
LB: loop body
LE: loop exit
PB: predicated region body
PF: predicated region fallthrough
CT: control target
= control target key end

     0   :  { %10 = vsyncpa [#allocation3], 0  ;;  %s1760_s0 = inlined_call_operand.vmem [shape: f32[100,27], index: 0, kind: input, shape index: {}]   ;;  %s1761_s1 = inlined_call_operand.vmem [shape: f32[100,256], index: 1, kind: input, shape index: {}]   ;;  %s1762_s2 = inlined_call_operand.vmem [shape: f32[27,256], index: 2, kind: input, shape index: {}]   ;;  %s1763_s3 = inlined_call_operand.vmem [shape: f32[256,256], index: 3, kind: input, shape index: {}]   ;;  %s1764_s4 = inlined_call_operand.vmem [shape: f32[256,256], index: 4, kind: input, shape index: {}]   ;;  %s1765_s5 = inlined_call_operand.hbm [shape: f32[100,256], index: 5, kind: output, shape index: {}]  }
   0x1   :  { %12 = vsyncpa [#allocation3 + $0x1], 0  ;;  %s1204_s18 = smov 0   ;;  %s1206_s19 = smov 0  }
   0x2   :  { %s1208_s20 = smov 0   ;;  %s1210_s21 = smov 0  }
   0x3 LB: > { %s1225_s22 = sadd.s32 4294967295, %s1167_s21   ;;  %s884_s23 = sadd.s32 4294967294, %s1167_s21   ;;  %s1167_s21 = sphi %s1210_s21, %s1771_s21   ;;  %s1163_s20 = sphi %s1208_s20, %s1770_s20   ;;  %s1159_s19 = sphi %s1206_s19, %s1769_s19   ;;  %s1155_s18 = sphi %s1204_s18, %s1768_s18  }
   0x4   : > { %s1229_s24 = sadd.s32 1, %s1167_s21   ;;  %s140_s25 = sadd.s32 1, %s1163_s20 }
   0x5   : > { %s137_s26 = ssub.s32 %s1167_s21, %s1229_s24  ;;  %p150_p0 = scmp.ne.s32.totalorder %s1163_s20, %s1159_s19 }
   0x6   : > { %p138_p1 = scmp.eq.s32.totalorder %s137_s26, 0  ;;  %p151_p2 = scmp.eq.s32.totalorder %s1225_s22, 6 }
   0x7   : > { %p156_p3 = scmp.ne.s32.totalorder %s1159_s19, %s1155_s18  ;;  %p157_p4 = scmp.eq.s32.totalorder %s884_s23, 6 }
   0x8   : > { %s1240_s27 = scalar_select %p138_p1, %s1163_s20, %s140_s25  }
   0x9   : > { %p1242_p5 = por %p151_p2, %p150_p0  ;;  %p1246_p6 = por %p157_p4, %p156_p3 }
   0xa   : > { %p887_p7 = scmp.ge.s32.totalorder %s1167_s21, 1  ;;  %p221_p8 = scmp.lt.s32.totalorder %s1167_s21, 8 }
   0xc   : > { %p222_p9 = pnand %p887_p7, %p221_p8 }
   0xd   : > { %s1253_s30 = sshll.u32 (!%p222_p9), %s1225_s22, 1  ;;  %vm303_vm0 = vcmask (!%p222_p9), 220160   ;;  %v338_v8 = vld [vmem:[%s1762_s2 + $0x8] sm:$0xff] (!%p222_p9)  ;;  %v340_v9 = vld [vmem:[%s1762_s2 + $0x18] sm:$0xff] (!%p222_p9)  ;;  %v337_v10 = vld [vmem:[%s1762_s2] sm:$0xff] (!%p222_p9)  ;;  %vm351_vm1 = vcmask (!%p222_p9), 1042432  }
   0xe   : > { %225 = sbr.rel (%p222_p9) target bundleno = 831 (0x33f), region = 40  ;;  %p269_p10 = scmp.lt.s32.totalorder (!%p222_p9), %s1253_s30, 12  ;;  %v913_v11 = vpack.c.bf16 (!%p222_p9), %v340_v9, %v338_v8  ;;  %v339_v12 = vld [vmem:[%s1762_s2 + $0x10] sm:$0xff] (!%p222_p9)  ;;  %v342_v13 = vld [vmem:[%s1762_s2 + $0x28] sm:$0xff] (!%p222_p9)  ;;  %v344_v14 = vld [vmem:[%s1762_s2 + $0x38] sm:$0x7] (!%p222_p9) }
   0xf   : > { %v1169_v15 = vmov (!%p222_p9), 0.0   ;;  %v915_v16 = vpack.c.bf16 (!%p222_p9), %v339_v12, %v337_v10  ;;  %v917_v17 = vpack.c.bf16 (!%p222_p9), %v344_v14, %v342_v13  ;;  %vm1170_vm2 = vmmov (!%p222_p9), 1   ;;  %v341_v18 = vld [vmem:[%s1762_s2 + $0x20] sm:$0xff] (!%p222_p9)  ;;  %v343_v19 = vld [vmem:[%s1762_s2 + $0x30] sm:$0x7] (!%p222_p9)  ;;  %v516_v21 = vld [vmem:[%s1764_s4 + $0x8] sm:$0xff] (!%p222_p9) }
  0x10   : > { %422 = vmatprep.mubr.f32.mxu0 (!%p222_p9), %v1169_v15  ;;  %vm918_vm3 = vmpackc.low (!%p222_p9), %vm351_vm1, %vm1170_vm2  ;;  %914 = vmatprep.subr.bf16.mxu0 (!%p222_p9), %v913_v11  ;;  %v920_v20 = vpack.c.bf16 (!%p222_p9), %v343_v19, %v341_v18  ;;  %v518_v22 = vld [vmem:[%s1764_s4 + $0x18] sm:$0xff] (!%p222_p9)  ;;  %v452_v24 = vld [vmem:[%s1763_s3 + $0x8] sm:$0xff] (!%p222_p9) }
  0x11   : > { %916 = vmatpush1.bf16.msra.mxu0 (!%p222_p9), %v915_v16  ;;  %v923_v23 = vpack.c.bf16 (!%p222_p9), %v518_v22, %v516_v21  ;;  %v454_v25 = vld [vmem:[%s1763_s3 + $0x18] sm:$0xff] (!%p222_p9)  ;;  %v451_v27 = vld [vmem:[%s1763_s3] sm:$0xff] (!%p222_p9)  ;;  %v453_v28 = vld [vmem:[%s1763_s3 + $0x10] sm:$0xff] (!%p222_p9) }
  0x12   : > { %919 = vmatprep.subr.msk.bf16.mxu0 (!%p222_p9), %vm918_vm3, %v917_v17  ;;  %v987_v26 = vpack.c.bf16 (!%p222_p9), %v454_v25, %v452_v24  ;;  %v989_v29 = vpack.c.bf16 (!%p222_p9), %v453_v28, %v451_v27  ;;  %v456_v30 = vld [vmem:[%s1763_s3 + $0x28] sm:$0xff] (!%p222_p9)  ;;  %v458_v31 = vld [vmem:[%s1763_s3 + $0x38] sm:$0xff] (!%p222_p9)  ;;  %v455_v32 = vld [vmem:[%s1763_s3 + $0x20] sm:$0xff] (!%p222_p9) }
  0x13   : > { %v991_v33 = vpack.c.bf16 (!%p222_p9), %v458_v31, %v456_v30  ;;  %v457_v34 = vld [vmem:[%s1763_s3 + $0x30] sm:$0xff] (!%p222_p9)  ;;  %v460_v36 = vld [vmem:[%s1763_s3 + $0x48] sm:$0xff] (!%p222_p9)  ;;  %v462_v37 = vld [vmem:[%s1763_s3 + $0x58] sm:$0xff] (!%p222_p9) }
  0x14   : > { %988 = vmatprep.subr.bf16.mxu1 (!%p222_p9), %v987_v26  ;;  %v993_v35 = vpack.c.bf16 (!%p222_p9), %v457_v34, %v455_v32  ;;  %v459_v38 = vld [vmem:[%s1763_s3 + $0x40] sm:$0xff] (!%p222_p9)  ;;  %v461_v39 = vld [vmem:[%s1763_s3 + $0x50] sm:$0xff] (!%p222_p9)  ;;  %v995_v40 = vpack.c.bf16 (!%p222_p9), %v462_v37, %v460_v36  ;;  %v464_v42 = vld [vmem:[%s1763_s3 + $0x68] sm:$0xff] (!%p222_p9) }
  0x15   : > { %s1257_s6 = scalar_select %p269_p10, %s1253_s30, 12  ;;  %922 = vmatpush1.bf16.msk.msra.mxu0 %vm918_vm3, %v920_v20  ;;  %990 = vmatpush1.bf16.msra.mxu1 %v989_v29  ;;  %v997_v41 = vpack.c.bf16 %v461_v39, %v459_v38  ;;  %v466_v43 = vld [vmem:[%s1763_s3 + $0x78] sm:$0xff]  ;;  %v463_v45 = vld [vmem:[%s1763_s3 + $0x60] sm:$0xff]  ;;  %v465_v46 = vld [vmem:[%s1763_s3 + $0x70] sm:$0xff] }
  0x16   : > { %924 = vmatprep.subr.bf16.mxu0 %v923_v23  ;;  %992 = vmatprep.subr.bf16.mxu1 %v991_v33  ;;  %v999_v44 = vpack.c.bf16 %v466_v43, %v464_v42  ;;  %v1001_v47 = vpack.c.bf16 %v465_v46, %v463_v45  ;;  %v468_v48 = vld [vmem:[%s1763_s3 + $0x88] sm:$0xff]  ;;  %v470_v49 = vld [vmem:[%s1763_s3 + $0x98] sm:$0xff]  ;;  %v467_v51 = vld [vmem:[%s1763_s3 + $0x80] sm:$0xff] }
  0x17   : > { %s890_s7 = sshll.u32 %s1257_s6, 3  ;;  %v1003_v50 = vpack.c.bf16 %v470_v49, %v468_v48  ;;  %v469_v52 = vld [vmem:[%s1763_s3 + $0x90] sm:$0xff]  ;;  %v472_v54 = vld [vmem:[%s1763_s3 + $0xa8] sm:$0xff]  ;;  %v474_v55 = vld [vmem:[%s1763_s3 + $0xb8] sm:$0xff]  ;;  %s909_s17 = sshll.u32 %s1257_s6, 4 }
  0x18   : > { %s272_s10 = scalar_lea.vmem %s1760_s0, %s890_s7  ;;  %v1005_v53 = vpack.c.bf16 %v469_v52, %v467_v51  ;;  %v1007_v56 = vpack.c.bf16 %v474_v55, %v472_v54  ;;  %v471_v57 = vld [vmem:[%s1763_s3 + $0xa0] sm:$0xff]  ;;  %v473_v58 = vld [vmem:[%s1763_s3 + $0xb0] sm:$0xff]  ;;  %v476_v60 = vld [vmem:[%s1763_s3 + $0xc8] sm:$0xff]  ;;  %s288_s26 = scalar_lea.vmem %s1761_s1, %s909_s17 }
  0x19   : > { %v1263_v0 = vld [vmem:[%s272_s10 + $0x8] sm:$0xff]  ;;  %v1265_v1 = vld [vmem:[%s272_s10] sm:$0xff]  ;;  %994 = vmatpush1.bf16.msra.mxu1 %v993_v35  ;;  %v1009_v59 = vpack.c.bf16 %v473_v58, %v471_v57  ;;  %v478_v61 = vld [vmem:[%s1763_s3 + $0xd8] sm:$0xff]  ;;  %s261_s6 = sand.u32 1, %s1159_s19   ;;  %s797_s10 = ssub.s32 (%p1242_p5), 13, %s1253_s30 }
  0x1a   : > { %v307_v2 = vsel %vm303_vm0, %v1263_v0, 0.0  ;;  %v304_v3 = vsel %vm303_vm0, %v1265_v1, 0.0  ;;  %v314_v4 = vmul.f32 %v1263_v0, %v1263_v0  ;;  %v313_v5 = vmul.f32 %v1265_v1, %v1265_v1  ;;  %996 = vmatprep.subr.bf16.mxu1 %v995_v40  ;;  %v475_v63 = vld [vmem:[%s1763_s3 + $0xc0] sm:$0xff]  ;;  %v481_v8 = vld [vmem:[%s1763_s3 + $0xf0] sm:$0xff]  ;;  %v484_v10 = vld [vmem:[%s1763_s3 + $0x108] sm:$0xff]  ;;  %s888_s7 = sshll.u32 %s261_s6, 5 }
  0x1b   : > { %308 = vadd.xlane.f32.xlu1 %v307_v2  ;;  %305 = vadd.xlane.f32.xlu0 %v304_v3  ;;  %v1011_v62 = vpack.c.bf16 %v478_v61, %v476_v60  ;;  %v477_v2 = vld [vmem:[%s1763_s3 + $0xd0] sm:$0xff]  ;;  %v486_v11 = vld [vmem:[%s1763_s3 + $0x118] sm:$0xff]  ;;  %v483_v13 = vld [vmem:[%s1763_s3 + $0x100] sm:$0xff]  ;;  %s263_s8 = scalar_lea.vmem [#allocation2], %s888_s7  ;;  %s1700_s9 = scalar_lea.sflag [#allocation3], %s261_s6 }
  0x1c   : > { %v318_v6 = vsel %vm303_vm0, %v314_v4, 0.0  ;;  %v315_v7 = vsel %vm303_vm0, %v313_v5, 0.0  ;;  %v1013_v3 = vpack.c.bf16 %v477_v2, %v475_v63  ;;  %v480_v4 = vld [vmem:[%s1763_s3 + $0xe8] sm:$0xff]  ;;  %v482_v5 = vld [vmem:[%s1763_s3 + $0xf8] sm:$0xff]  ;;  %v1019_v12 = vpack.c.bf16 %v486_v11, %v484_v10  ;;  %v485_v14 = vld [vmem:[%s1763_s3 + $0x110] sm:$0xff]  ;;  %p798_p11 = scmp.lt.s32.totalorder (%p1242_p5), %s797_s10, 2 }
  0x1d   : > { %998 = vmatpush1.bf16.msra.mxu1 %v997_v41  ;;  %v1021_v16 = vpack.c.bf16 %v485_v14, %v483_v13  ;;  %v488_v17 = vld [vmem:[%s1763_s3 + $0x128] sm:$0xff]  ;;  %v490_v18 = vld [vmem:[%s1763_s3 + $0x138] sm:$0xff]  ;;  %v487_v20 = vld [vmem:[%s1763_s3 + $0x120] sm:$0xff] }
  0x1e   : > { %1000 = vmatprep.subr.bf16.mxu1 %v999_v44  ;;  %v1023_v19 = vpack.c.bf16 %v490_v18, %v488_v17  ;;  %v489_v21 = vld [vmem:[%s1763_s3 + $0x130] sm:$0xff]  ;;  %v492_v23 = vld [vmem:[%s1763_s3 + $0x148] sm:$0xff]  ;;  %v494_v24 = vld [vmem:[%s1763_s3 + $0x158] sm:$0xff] }
  0x1f   : > { %319 = vadd.xlane.f32.xlu1 %v318_v6  ;;  %316 = vadd.xlane.f32.xlu0 %v315_v7  ;;  %v1015_v6 = vpack.c.bf16 %v482_v5, %v480_v4  ;;  %v479_v7 = vld [vmem:[%s1763_s3 + $0xe0] sm:$0xff]  ;;  %v1025_v22 = vpack.c.bf16 %v489_v21, %v487_v20  ;;  %v1027_v25 = vpack.c.bf16 %v494_v24, %v492_v23  ;;  %v493_v27 = vld [vmem:[%s1763_s3 + $0x150] sm:$0xff]  ;;  %v496_v29 = vld [vmem:[%s1763_s3 + $0x168] sm:$0xff] }
  0x20   : > { %v1017_v9 = vpack.c.bf16 %v481_v8, %v479_v7  ;;  %v491_v26 = vld [vmem:[%s1763_s3 + $0x140] sm:$0xff]  ;;  %v498_v30 = vld [vmem:[%s1763_s3 + $0x178] sm:$0xff]  ;;  %v497_v33 = vld [vmem:[%s1763_s3 + $0x170] sm:$0xff] }
  0x21   : > { %1002 = vmatpush1.bf16.msra.mxu1 %v1001_v47  ;;  %v1029_v28 = vpack.c.bf16 %v493_v27, %v491_v26  ;;  %v1031_v31 = vpack.c.bf16 %v498_v30, %v496_v29  ;;  %v495_v32 = vld [vmem:[%s1763_s3 + $0x160] sm:$0xff]  ;;  %v500_v35 = vld [vmem:[%s1763_s3 + $0x188] sm:$0xff]  ;;  %v502_v36 = vld [vmem:[%s1763_s3 + $0x198] sm:$0xff] }
  0x22   : > { %1004 = vmatprep.subr.bf16.mxu1 %v1003_v50  ;;  %v1033_v34 = vpack.c.bf16 %v497_v33, %v495_v32  ;;  %v1035_v37 = vpack.c.bf16 %v502_v36, %v500_v35  ;;  %v499_v38 = vld [vmem:[%s1763_s3 + $0x180] sm:$0xff]  ;;  %v501_v39 = vld [vmem:[%s1763_s3 + $0x190] sm:$0xff]  ;;  %v504_v41 = vld [vmem:[%s1763_s3 + $0x1a8] sm:$0xff] }
  0x23   : > { %v1037_v40 = vpack.c.bf16 %v501_v39, %v499_v38  ;;  %v506_v42 = vld [vmem:[%s1763_s3 + $0x1b8] sm:$0xff]  ;;  %v503_v44 = vld [vmem:[%s1763_s3 + $0x1a0] sm:$0xff]  ;;  %v505_v45 = vld [vmem:[%s1763_s3 + $0x1b0] sm:$0xff] }
  0x24   : > { %v1039_v43 = vpack.c.bf16 %v506_v42, %v504_v41  ;;  %v1041_v46 = vpack.c.bf16 %v505_v45, %v503_v44  ;;  %v508_v47 = vld [vmem:[%s1763_s3 + $0x1c8] sm:$0xff]  ;;  %v510_v48 = vld [vmem:[%s1763_s3 + $0x1d8] sm:$0xff]  ;;  %v507_v50 = vld [vmem:[%s1763_s3 + $0x1c0] sm:$0xff] }
  0x25   : > { %1006 = vmatpush1.bf16.msra.mxu1 %v1005_v53  ;;  %v1043_v49 = vpack.c.bf16 %v510_v48, %v508_v47  ;;  %v509_v51 = vld [vmem:[%s1763_s3 + $0x1d0] sm:$0xff]  ;;  %v515_v7 = vld [vmem:[%s1764_s4] sm:$0xff]  ;;  %v522_v10 = vld [vmem:[%s1764_s4 + $0x38] sm:$0xff] }
  0x26   : > { %1008 = vmatprep.subr.bf16.mxu1 %v1007_v56  ;;  %v1045_v52 = vpack.c.bf16 %v509_v51, %v507_v50  ;;  %v517_v8 = vld [vmem:[%s1764_s4 + $0x10] sm:$0xff]  ;;  %v519_v17 = vld [vmem:[%s1764_s4 + $0x20] sm:$0xff]  ;;  %v524_v20 = vld [vmem:[%s1764_s4 + $0x48] sm:$0xff] }
  0x27   : > { %v925_v13 = vpack.c.bf16 %v517_v8, %v515_v7  ;;  %v521_v18 = vld [vmem:[%s1764_s4 + $0x30] sm:$0xff]  ;;  %v527_v29 = vld [vmem:[%s1764_s4 + $0x60] sm:$0xff]  ;;  %v534_v32 = vld [vmem:[%s1764_s4 + $0x98] sm:$0xff] }
  0x28   : > { %v525_v26 = vld [vmem:[%s1764_s4 + $0x50] sm:$0xff]  ;;  %v531_v35 = vld [vmem:[%s1764_s4 + $0x80] sm:$0xff]  ;;  %v538_v38 = vld [vmem:[%s1764_s4 + $0xb8] sm:$0xff] }
  0x29   : > { %1010 = vmatpush1.bf16.msra.mxu1 %v1009_v59  ;;  %v529_v30 = vld [vmem:[%s1764_s4 + $0x70] sm:$0xff]  ;;  %v535_v41 = vld [vmem:[%s1764_s4 + $0xa0] sm:$0xff]  ;;  %v542_v44 = vld [vmem:[%s1764_s4 + $0xd8] sm:$0xff] }
  0x2a   : > { %1012 = vmatprep.subr.bf16.mxu1 %v1011_v62  ;;  %v937_v33 = vpack.c.bf16 %v529_v30, %v527_v29  ;;  %v533_v36 = vld [vmem:[%s1764_s4 + $0x90] sm:$0xff]  ;;  %v539_v47 = vld [vmem:[%s1764_s4 + $0xc0] sm:$0xff]  ;;  %v546_v50 = vld [vmem:[%s1764_s4 + $0xf8] sm:$0xff] }
  0x2b   : > { %v941_v39 = vpack.c.bf16 %v533_v36, %v531_v35  ;;  %v537_v42 = vld [vmem:[%s1764_s4 + $0xb0] sm:$0xff]  ;;  %v578_v35 = vld [vmem:[%s1764_s4 + $0x1f8] sm:$0xff] }
  0x2c   : > { %v945_v45 = vpack.c.bf16 %v537_v42, %v535_v41  ;;  %v541_v48 = vld [vmem:[%s1764_s4 + $0xd0] sm:$0xff]  ;;  %v514_v41 = vld [vmem:[%s1763_s3 + $0x1f8] sm:$0xff]  ;;  %v511_v42 = vld [vmem:[%s1763_s3 + $0x1e0] sm:$0xff] }
  0x2d   : > { %1014 = vmatpush1.bf16.msra.mxu1 %v1013_v3  ;;  %v949_v51 = vpack.c.bf16 %v541_v48, %v539_v47  ;;  %v447_v47 = vld [vmem:[%s288_s26] sm:$0xff]  ;;  %v450_v48 = vld [vmem:[%s288_s26 + $0x18] sm:$0xff] }
  0x2e   : > { %1016 = vmatprep.subr.bf16.mxu1 %v1015_v6 }
  0x31   : > { %1018 = vmatpush1.bf16.msra.mxu1 %v1017_v9  ;;  %v520_v9 = vld [vmem:[%s1764_s4 + $0x28] sm:$0xff] }
  0x32   : > { %1020 = vmatprep.subr.bf16.mxu1 %v1019_v12 }
  0x35   : > { %1022 = vmatpush1.bf16.msra.mxu1 %v1021_v16  ;;  %v927_v16 = vpack.c.bf16 %v522_v10, %v520_v9  ;;  %v555_v9 = vld [vmem:[%s1764_s4 + $0x140] sm:$0xff]  ;;  %v557_v10 = vld [vmem:[%s1764_s4 + $0x150] sm:$0xff] }
  0x36   : > { %1024 = vmatprep.subr.bf16.mxu1 %v1023_v19 }
  0x39   : > { %1026 = vmatpush1.bf16.msra.mxu1 %v1025_v22  ;;  %v929_v22 = vpack.c.bf16 %v521_v18, %v519_v17  ;;  %v561_v17 = vld [vmem:[%s1764_s4 + $0x170] sm:$0xff]  ;;  %v564_v18 = vld [vmem:[%s1764_s4 + $0x188] sm:$0xff] }
  0x3a   : > { %1028 = vmatprep.subr.bf16.mxu1 %v1027_v25  ;;  %v523_v25 = vld [vmem:[%s1764_s4 + $0x40] sm:$0xff] }
  0x3b   : > { %v933_v27 = vpack.c.bf16 %v525_v26, %v523_v25 }
  0x3d   : > { %1030 = vmatpush1.bf16.msra.mxu1 %v1029_v28 }
  0x3e   : > { %1032 = vmatprep.subr.bf16.mxu1 %v1031_v31  ;;  %v532_v31 = vld [vmem:[%s1764_s4 + $0x88] sm:$0xff] }
  0x41   : > { %1034 = vmatpush1.bf16.msra.mxu1 %v1033_v34  ;;  %v939_v34 = vpack.c.bf16 %v534_v32, %v532_v31  ;;  %v571_v31 = vld [vmem:[%s1764_s4 + $0x1c0] sm:$0xff]  ;;  %v573_v32 = vld [vmem:[%s1764_s4 + $0x1d0] sm:$0xff] }
  0x42   : > { %1036 = vmatprep.subr.bf16.mxu1 %v1035_v37  ;;  %v536_v37 = vld [vmem:[%s1764_s4 + $0xa8] sm:$0xff] }
  0x45   : > { %1038 = vmatpush1.bf16.msra.mxu1 %v1037_v40  ;;  %v943_v40 = vpack.c.bf16 %v538_v38, %v536_v37  ;;  %v575_v37 = vld [vmem:[%s1764_s4 + $0x1e0] sm:$0xff]  ;;  %v577_v38 = vld [vmem:[%s1764_s4 + $0x1f0] sm:$0xff] }
  0x46   : > { %1040 = vmatprep.subr.bf16.mxu1 %v1039_v43  ;;  %v540_v43 = vld [vmem:[%s1764_s4 + $0xc8] sm:$0xff] }
  0x49   : > { %1042 = vmatpush1.bf16.msra.mxu1 %v1041_v46  ;;  %v947_v46 = vpack.c.bf16 %v542_v44, %v540_v43  ;;  %v513_v43 = vld [vmem:[%s1763_s3 + $0x1f0] sm:$0xff] }
  0x4a   : > { %1044 = vmatprep.subr.bf16.mxu1 %v1043_v49  ;;  %v544_v49 = vld [vmem:[%s1764_s4 + $0xe8] sm:$0xff] }
  0x4d   : > { %1046 = vmatpush1.bf16.msra.mxu1 %v1045_v52  ;;  %v951_v52 = vpack.c.bf16 %v546_v50, %v544_v49  ;;  %v449_v49 = vld [vmem:[%s288_s26 + $0x10] sm:$0xff] }
  0xa8   : > { %v309_v53 = vpop.xlane.xlu1 %308  ;;  %v306_v54 = vpop.xlane.xlu0 %305 }
  0xa9   : > { %v312_v55 = vmul.f32 0.037037037, %v309_v53  ;;  %v311_v56 = vmul.f32 0.037037037, %v306_v54  ;;  %v543_v53 = vld [vmem:[%s1764_s4 + $0xe0] sm:$0xff]  ;;  %v545_v54 = vld [vmem:[%s1764_s4 + $0xf0] sm:$0xff] }
  0xab   : > { %v324_v57 = vmul.f32 %v312_v55, %v312_v55  ;;  %v323_v60 = vmul.f32 %v311_v56, %v311_v56  ;;  %v329_v11 = vsub.f32 %v1265_v1, %v311_v56  ;;  %v526_v1 = vld [vmem:[%s1764_s4 + $0x58] sm:$0xff]  ;;  %v330_v21 = vsub.f32 %v1263_v0, %v312_v55  ;;  %v528_v0 = vld [vmem:[%s1764_s4 + $0x68] sm:$0xff] }
  0xac   : > { %v320_v58 = vpop.xlane.xlu1 %319  ;;  %v317_v59 = vpop.xlane.xlu0 %316  ;;  %v931_v24 = vpack.c.bf16 %v526_v1, %v524_v20  ;;  %v548_v55 = vld [vmem:[%s1764_s4 + $0x108] sm:$0xff]  ;;  %v550_v56 = vld [vmem:[%s1764_s4 + $0x118] sm:$0xff] }
  0xad   : > { %v322_v61 = vmul.f32 0.037037037, %v320_v58  ;;  %v321_v62 = vmul.f32 0.037037037, %v317_v59  ;;  %v955_v58 = vpack.c.bf16 %v550_v56, %v548_v55  ;;  %v547_v59 = vld [vmem:[%s1764_s4 + $0x100] sm:$0xff] }
  0xaf   : > { %v326_v63 = vsub.f32 %v322_v61, %v324_v57  ;;  %v325_v2 = vsub.f32 %v321_v62, %v323_v60  ;;  %v953_v57 = vpack.c.bf16 %v545_v54, %v543_v53  ;;  %v549_v60 = vld [vmem:[%s1764_s4 + $0x110] sm:$0xff]  ;;  %v552_v61 = vld [vmem:[%s1764_s4 + $0x128] sm:$0xff]  ;;  %v554_v62 = vld [vmem:[%s1764_s4 + $0x138] sm:$0xff] }
  0xb1   : > { %v328_v3 = vmax.f32 %v326_v63, 0.0  ;;  %v327_v4 = vmax.f32 %v325_v2, 0.0  ;;  %v957_v63 = vpack.c.bf16 %v549_v60, %v547_v59  ;;  %v959_v2 = vpack.c.bf16 %v554_v62, %v552_v61 }
  0xb3   : > { %v331_v5 = vadd.f32 1e-05, %v327_v4  ;;  %v332_v6 = vadd.f32 1e-05, %v328_v3  ;;  %v551_v3 = vld [vmem:[%s1764_s4 + $0x120] sm:$0xff]  ;;  %v553_v4 = vld [vmem:[%s1764_s4 + $0x130] sm:$0xff] }
  0xb4   : > { %v961_v7 = vpack.c.bf16 %v553_v4, %v551_v3 }
  0xb5   : > { %1097 = vrsqrt.f32 %v331_v5  ;;  %v556_v5 = vld [vmem:[%s1764_s4 + $0x148] sm:$0xff] }
  0xb6   : > { %1099 = vrsqrt.f32 %v332_v6  ;;  %v558_v6 = vld [vmem:[%s1764_s4 + $0x158] sm:$0xff] }
  0xb7   : > { %v963_v8 = vpack.c.bf16 %v558_v6, %v556_v5 }
  0xbf   : > { %v1098_v12 = vpop.eup %1097 }
  0xc0   : > { %v335_v14 = vmul.f32 %v1098_v12, %v329_v11  ;;  %v1100_v19 = vpop.eup %1099  ;;  %v560_v11 = vld [vmem:[%s1764_s4 + $0x168] sm:$0xff]  ;;  %v562_v12 = vld [vmem:[%s1764_s4 + $0x178] sm:$0xff] }
  0xc1   : > { %v336_v23 = vmul.f32 %v1100_v19, %v330_v21  ;;  %v566_v19 = vld [vmem:[%s1764_s4 + $0x198] sm:$0xff]  ;;  %v563_v21 = vld [vmem:[%s1764_s4 + $0x180] sm:$0xff] }
  0xc2   : > { %896 = vmatmul.mubr.msk.f32.vlgmr.msra.gmra.mrb[0].mxu0 %vm303_vm0, %v335_v14  ;;  %v967_v14 = vpack.c.bf16 %v562_v12, %v560_v11  ;;  %v971_v1 = vpack.c.bf16 %v566_v19, %v564_v18 }
  0xc3   : > { %428 = vmatprep.mubr.f32.mxu0 %v1169_v15  ;;  %926 = vmatpush1.bf16.msra.mxu0 %v925_v13  ;;  %v530_v15 = vld [vmem:[%s1764_s4 + $0x78] sm:$0xff]  ;;  %v965_v13 = vpack.c.bf16 %v557_v10, %v555_v9 }
  0xc4   : > { %928 = vmatprep.subr.bf16.mxu0 %v927_v16  ;;  %v935_v28 = vpack.c.bf16 %v530_v15, %v528_v0  ;;  %v559_v16 = vld [vmem:[%s1764_s4 + $0x160] sm:$0xff]  ;;  %v569_v15 = vld [vmem:[%s1764_s4 + $0x1b0] sm:$0xff] }
  0xc5   : > { %v969_v20 = vpack.c.bf16 %v561_v17, %v559_v16  ;;  %v567_v0 = vld [vmem:[%s1764_s4 + $0x1a0] sm:$0xff] }
  0xc6   : > { %897 = vmatmul.mubr.msk.f32.gmra.mrb[2].mxu0 %vm303_vm0, %v336_v23  ;;  %v568_v23 = vld [vmem:[%s1764_s4 + $0x1a8] sm:$0xff]  ;;  %v977_v29 = vpack.c.bf16 %v569_v15, %v567_v0 }
  0xc7   : > { %930 = vmatpush1.bf16.msra.mxu0 %v929_v22  ;;  %v565_v22 = vld [vmem:[%s1764_s4 + $0x190] sm:$0xff] }
  0xc8   : > { %932 = vmatprep.subr.bf16.mxu0 %v931_v24  ;;  %v570_v24 = vld [vmem:[%s1764_s4 + $0x1b8] sm:$0xff]  ;;  %v973_v25 = vpack.c.bf16 %v565_v22, %v563_v21 }
  0xc9   : > { %v975_v26 = vpack.c.bf16 %v570_v24, %v568_v23 }
  0xcb   : > { %934 = vmatpush1.bf16.msra.mxu0 %v933_v27  ;;  %v572_v27 = vld [vmem:[%s1764_s4 + $0x1c8] sm:$0xff] }
  0xcc   : > { %936 = vmatprep.subr.bf16.mxu0 %v935_v28  ;;  %v574_v28 = vld [vmem:[%s1764_s4 + $0x1d8] sm:$0xff] }
  0xcd   : > { %v979_v30 = vpack.c.bf16 %v574_v28, %v572_v27 }
  0xcf   : > { %938 = vmatpush1.bf16.msra.mxu0 %v937_v33  ;;  %v981_v33 = vpack.c.bf16 %v573_v32, %v571_v31 }
  0xd0   : > { %940 = vmatprep.subr.bf16.mxu0 %v939_v34  ;;  %v576_v34 = vld [vmem:[%s1764_s4 + $0x1e8] sm:$0xff] }
  0xd1   : > { %v983_v36 = vpack.c.bf16 %v578_v35, %v576_v34 }
  0xd3   : > { %942 = vmatpush1.bf16.msra.mxu0 %v941_v39  ;;  %v512_v39 = vld [vmem:[%s1763_s3 + $0x1e8] sm:$0xff] }
  0xd4   : > { %944 = vmatprep.subr.bf16.mxu0 %v943_v40  ;;  %v985_v40 = vpack.c.bf16 %v577_v38, %v575_v37  ;;  %v1047_v44 = vpack.c.bf16 %v514_v41, %v512_v39 }
  0xd6   : > { %1048 = vmatprep.subr.bf16.mxu1 %v1047_v44 }
  0xd7   : > { %946 = vmatpush1.bf16.msra.mxu0 %v945_v45  ;;  %v1049_v45 = vpack.c.bf16 %v513_v43, %v511_v42 }
  0xd8   : > { %948 = vmatprep.subr.bf16.mxu0 %v947_v46  ;;  %v448_v46 = vld [vmem:[%s288_s26 + $0x8] sm:$0xff] }
  0xd9   : > { %1050 = vmatpush1.bf16.msra.mxu1 %v1049_v45  ;;  %643 = vmatprep.mubr.f32.mxu0 %v448_v46 }
  0xdb   : > { %950 = vmatpush1.bf16.msra.mxu0 %v949_v51 }
  0xdc   : > { %952 = vmatprep.subr.bf16.mxu0 %v951_v52 }
  0xdf   : > { %954 = vmatpush1.bf16.msra.mxu0 %v953_v57 }
  0xe0   : > { %956 = vmatprep.subr.bf16.mxu0 %v955_v58 }
  0xe3   : > { %958 = vmatpush1.bf16.msra.mxu0 %v957_v63 }
  0xe4   : > { %960 = vmatprep.subr.bf16.mxu0 %v959_v2 }
  0xe7   : > { %962 = vmatpush1.bf16.msra.mxu0 %v961_v7 }
  0xe8   : > { %964 = vmatprep.subr.bf16.mxu0 %v963_v8 }
  0xeb   : > { %966 = vmatpush1.bf16.msra.mxu0 %v965_v13 }
  0xec   : > { %968 = vmatprep.subr.bf16.mxu0 %v967_v14 }
  0xef   : > { %970 = vmatpush1.bf16.msra.mxu0 %v969_v20 }
  0xf0   : > { %972 = vmatprep.subr.bf16.mxu0 %v971_v1 }
  0xf3   : > { %974 = vmatpush1.bf16.msra.mxu0 %v973_v25 }
  0xf4   : > { %976 = vmatprep.subr.bf16.mxu0 %v975_v26 }
  0xf7   : > { %978 = vmatpush1.bf16.msra.mxu0 %v977_v29 }
  0xf8   : > { %980 = vmatprep.subr.bf16.mxu0 %v979_v30 }
  0xfb   : > { %982 = vmatpush1.bf16.msra.mxu0 %v981_v33 }
  0xfc   : > { %984 = vmatprep.subr.bf16.mxu0 %v983_v36 }
  0xff   : > { %986 = vmatpush1.bf16.msra.mxu0 %v985_v40 }
 0x102   : > { %644 = vmatmul.mubr.f32.vlgmr.msra.gmra.mrb[4].mxu0 %v447_v47 }
 0x103   : > { %649 = vmatprep.mubr.f32.mxu0 %v450_v48 }
 0x106   : > { %650 = vmatmul.mubr.f32.gmra.mrb[6].mxu0 %v449_v49 }
 0x195   : > { %v424_v50 = vpop.f32.mrb[0].mxu0 }
 0x196   : > { %v439_v51 = vmul.f32 0.01, %v424_v50  ;;  %v426_v52 = vpop.f32.mrb[1].mxu0  ;;  %vm435_vm4 = vcmp.ge.f32.partialorder %v424_v50, 0.0 }
 0x197   : > { %v440_v53 = vmul.f32 0.01, %v426_v52  ;;  %vm436_vm5 = vcmp.ge.f32.partialorder %v426_v52, 0.0 }
 0x198   : > { %v443_v58 = vsel %vm435_vm4, %v424_v50, %v439_v51 }
 0x199   : > { %v430_v54 = vpop.f32.mrb[2].mxu0  ;;  %v444_v55 = vsel %vm436_vm5, %v426_v52, %v440_v53 }
 0x19a   : > { %v441_v56 = vmul.f32 0.01, %v430_v54  ;;  %v432_v57 = vpop.f32.mrb[3].mxu0  ;;  %720 = vmatprep.mubr.f32.mxu1 %v444_v55  ;;  %vm437_vm6 = vcmp.ge.f32.partialorder %v430_v54, 0.0 }
 0x19b   : > { %vm438_vm7 = vcmp.ge.f32.partialorder %v432_v57, 0.0  ;;  %v442_v59 = vmul.f32 0.01, %v432_v57  ;;  %721 = vmatmul.mubr.f32.vlgmr.msra.gmra.mrb[0].mxu1 %v443_v58 }
 0x19c   : > { %v445_v61 = vsel %vm437_vm6, %v430_v54, %v441_v56 }
 0x19d   : > { %v446_v60 = vsel %vm438_vm7, %v432_v57, %v442_v59 }
 0x19e   : > { %726 = vmatprep.mubr.f32.mxu1 %v446_v60 }
 0x19f   : > { %727 = vmatmul.mubr.f32.gmra.mrb[2].mxu1 %v445_v61 }
 0x1d5   : > { %v645_v62 = vpop.f32.mrb[4].mxu0 }
 0x1d6   : > { %v647_v63 = vpop.f32.mrb[5].mxu0 }
 0x1d9   : > { %v651_v2 = vpop.f32.mrb[6].mxu0 }
 0x1da   : > { %v653_v3 = vpop.f32.mrb[7].mxu0 }
 0x26e   : > { %v722_v4 = vpop.f32.mrb[0].mxu1 }
 0x26f   : > { %v723_v5 = vadd.f32 %v722_v4, %v645_v62  ;;  %v724_v6 = vpop.f32.mrb[1].mxu1 }
 0x270   : > { %v725_v7 = vadd.f32 %v724_v6, %v647_v63 }
 0x271   : > { %v742_v10 = vmul.f32 %v723_v5, %v723_v5 }
 0x272   : > { %v728_v8 = vpop.f32.mrb[2].mxu1  ;;  %v733_v9 = vadd.f32 %v725_v7, %v723_v5  ;;  %v743_v11 = vmul.f32 %v725_v7, %v725_v7 }
 0x273   : > { %v729_v12 = vadd.f32 %v728_v8, %v651_v2  ;;  %v730_v13 = vpop.f32.mrb[3].mxu1 }
 0x274   : > { %v731_v14 = vadd.f32 %v730_v13, %v653_v3  ;;  %734 = vadd.xlane.f32.xlu0 %v733_v9  ;;  %v746_v16 = vadd.f32 %v743_v11, %v742_v10 }
 0x275   : > { %v744_v18 = vmul.f32 %v729_v12, %v729_v12 }
 0x276   : > { %v736_v17 = vadd.f32 %v731_v14, %v729_v12  ;;  %v745_v19 = vmul.f32 %v731_v14, %v731_v14 }
 0x278   : > { %747 = vadd.xlane.f32.xlu0 %v746_v16  ;;  %737 = vadd.xlane.f32.xlu1 %v736_v17  ;;  %v749_v20 = vadd.f32 %v745_v19, %v744_v18 }
 0x27c   : > { %750 = vadd.xlane.f32.xlu1 %v749_v20 }
 0x301   : > { %v735_v1 = vpop.xlane.xlu0 %734 }
 0x302   : > { %v740_v21 = vmul.f32 0.00390625, %v735_v1 }
 0x304   : > { %v754_v24 = vmul.f32 %v740_v21, %v740_v21  ;;  %v760_v34 = vsub.f32 %v723_v5, %v740_v21  ;;  %v761_v35 = vsub.f32 %v725_v7, %v740_v21 }
 0x305   : > { %v748_v22 = vpop.xlane.xlu0 %747  ;;  %v738_v23 = vpop.xlane.xlu1 %737 }
 0x306   : > { %v752_v25 = vmul.f32 0.00390625, %v748_v22  ;;  %v741_v26 = vmul.f32 0.00390625, %v738_v23 }
 0x308   : > { %v756_v0 = vsub.f32 %v752_v25, %v754_v24  ;;  %v755_v28 = vmul.f32 %v741_v26, %v741_v26  ;;  %v762_v39 = vsub.f32 %v729_v12, %v741_v26  ;;  %v763_v40 = vsub.f32 %v731_v14, %v741_v26 }
 0x309   : > { %v751_v15 = vpop.xlane.xlu1 %750 }
 0x30a   : > { %v758_v27 = vmax.f32 %v756_v0, 0.0  ;;  %v753_v29 = vmul.f32 0.00390625, %v751_v15 }
 0x30c   : > { %v764_v30 = vadd.f32 1e-05, %v758_v27  ;;  %v757_v31 = vsub.f32 %v753_v29, %v755_v28 }
 0x30e   : > { %1101 = vrsqrt.f32 %v764_v30  ;;  %v759_v32 = vmax.f32 %v757_v31, 0.0 }
 0x310   : > { %v765_v33 = vadd.f32 1e-05, %v759_v32 }
 0x312   : > { %1103 = vrsqrt.f32 %v765_v33 }
 0x318   : > { %v1102_v36 = vpop.eup %1101 }
 0x319   : > { %v768_v37 = vmul.f32 %v1102_v36, %v760_v34  ;;  %v769_v38 = vmul.f32 %v1102_v36, %v761_v35 }
 0x31b   : > { %vm772_vm8 = vcmp.ge.f32.partialorder %v768_v37, 0.0  ;;  %vm773_vm9 = vcmp.ge.f32.partialorder %v769_v38, 0.0  ;;  %v776_v41 = vmul.f32 0.01, %v768_v37  ;;  %v777_v42 = vmul.f32 0.01, %v769_v38 }
 0x31c   : > { %v1104_v43 = vpop.eup %1103  ;;  %795 = sbr.rel (!%p1242_p5) target bundleno = 831 (0x33f), region = 44 }
 0x31d   : > { %v780_v44 = vsel %vm772_vm8, %v768_v37, %v776_v41  ;;  %v781_v45 = vsel %vm773_vm9, %v769_v38, %v777_v42  ;;  %v770_v46 = vmul.f32 %v1104_v43, %v762_v39  ;;  %v771_v47 = vmul.f32 %v1104_v43, %v763_v40 }
 0x31e   : > { %784 = vst [vmem:[%s263_s8] sm:$0xff] %v780_v44  ;;  %785 = vst [vmem:[%s263_s8 + $0x8] sm:$0xff] %v781_v45 }
 0x31f   : > { %vm774_vm10 = vcmp.ge.f32.partialorder %v770_v46, 0.0  ;;  %vm775_vm11 = vcmp.ge.f32.partialorder %v771_v47, 0.0  ;;  %v778_v48 = vmul.f32 0.01, %v770_v46  ;;  %v779_v49 = vmul.f32 0.01, %v771_v47 }
 0x321   : > { %v782_v50 = vsel %vm774_vm10, %v770_v46, %v778_v48  ;;  %v783_v51 = vsel %vm775_vm11, %v771_v47, %v779_v49 }
 0x322   : > { %786 = vst [vmem:[%s263_s8 + $0x10] sm:$0xff] %v782_v50  ;;  %787 = vst [vmem:[%s263_s8 + $0x18] sm:$0xff] %v783_v51 }
 0x323   : > { %s1773_s10 = smov (!%p798_p11, %s797_s10), 2 }
 0x324   : > { %s1705_s11 = sshll.u32 %s1773_s10, 8 }
 0x325   : > { %s803_s12 = ssub.s32 512, %s1705_s11 }
 0x326   : > { %804 = vsyncadd %s1700_s9, %s803_s12  ;;  %p902_p12 = scmp.ne.s32.totalorder %s1705_s11, 0  ;;  %s912_s13 = sshll.u32 %s1225_s22, 9 }
 0x327   : > { %s1714_s28 = scalar_lea.hbm %s1765_s5, %s912_s13  ;;  %s810_s16 = sshll.u32 %s263_s8, 4  ;;  %s1716_s16 = int_to_ptr.vmem [resolvable:$true] %s810_s16 }
 0x328   : > { %s1105_s30 = scalar_lea.vmem %s1716_s16, %s1705_s11  ;;  %s1171_s17 = smov [#allocation2]  }
 0x329   : > { %p1106_p13 = scmp.ne.s32.totalorder %s1716_s16, %s1105_s30  ;;  %s1109_s23 = sshll.u32 %s1171_s17, 4  ;;  %s1110_s23 = int_to_ptr.vmem [resolvable:$false] %s1109_s23 }
 0x32a   : > { %s1111_s22 = scalar_lea.vmem %s1110_s23, 1024  ;;  %p1112_p2 = scmp.lt.s32.totalorder %s1716_s16, %s1110_s23 }
 0x32b   : > { %p1107_p0 = pnand %p1106_p13, %p902_p12  ;;  %p1113_p3 = scmp.lt.s32.totalorder %s1111_s22, %s1105_s30 }
 0x32d   : > { %p1108_p1 = pneg %p1107_p0  ;;  %p1114_p4 = por %p1113_p3, %p1112_p2 }
 0x32f   : > { %p1115_p5 = pnand %p1114_p4, %p1108_p1 }
 0x331   : > { %1118 = shalt.err (!%p1115_p5)
}
 0x332   : > { %s1119_s25 = scalar_lea.hbm %s1714_s28, %s1705_s11  ;;  %s1123_s7 = scalar_lea.hbm %s1765_s5, 3328 }
 0x333   : > { %p1120_p7 = scmp.ne.s32.totalorder %s1714_s28, %s1119_s25  ;;  %p1124_p10 = scmp.lt.u32.totalorder %s1714_s28, %s1765_s5 }
 0x334   : > { %p1125_p11 = scmp.lt.u32.totalorder %s1123_s7, %s1119_s25  ;;  %p1127_p0 = scmp.lt.u32.totalorder %s1119_s25, %s1714_s28 }
 0x335   : > { %p1121_p8 = pnand %p1120_p7, %p902_p12 }
 0x336   : > { %p1126_p13 = por %p1125_p11, %p1124_p10 }
 0x337   : > { %p1122_p9 = pneg %p1121_p8 }
 0x338   : > { %p1128_p1 = por %p1127_p0, %p1126_p13 }
 0x33a   : > { %p1129_p2 = pnand %p1128_p1, %p1122_p9 }
 0x33c   : > { %1132 = shalt.err (!%p1129_p2)
}
 0x33d   : > { %s1172_s12 = smov 256   ;;  %s1173_s13 = smov 16  }
 0x33e   : > { %816 = dma.vmem_to_hbm [thread:$0]  (%p902_p12), %s1716_s16, %s1705_s11, %s1714_s28, %s1700_s9, %s1172_s12, %s1172_s12, %s1173_s13  }
 0x33f PF: > { %p1060_p3 = scmp.ge.s32.totalorder %s1167_s21, 2  ;;  %s825_s14 = sand.u32 1, %s1155_s18  }
 0x340   : > { %s826_s15 = scalar_lea.sflag [#allocation3], %s825_s14 }
 0x341   : > { %p1057_p4 = pnand %p1060_p3, %p1246_p6 }
 0x343   : > { %1150 = dma.done.wait (!%p1057_p4), %s826_s15, 512  }
 0x344   : > { %1152 = vsyncadd (!%p1057_p4), %s826_s15, 4294966784  ;;  %p15_p5 = scmp.ge.s32.totalorder %s1229_s24, 9   ;;  %s1768_s18 = smov %s1159_s19 }
 0x345   : > { %s1769_s19 = smov %s1163_s20  ;;  %s1770_s20 = smov %s1240_s27 }
 0x346   : > { %s1771_s21 = smov %s1229_s24  ;;  %17 = sbr.rel (!%p15_p5) target bundleno = 3 (0x3), region = 78 }
 0x34d   :  { %831 = vsyncpa [#allocation3], 1 }
 0x34e   :  { %833 = vsyncpa [#allocation3 + $0x1], 1 }

</bundles_post_ra>
